<compile_context>
chip_gen: v7x
topology: tpu7x:2x2x1
jax: 0.10.0
libtpu: 0.0.40
codegen_flags: <defaults>
</compile_context>

<pallas_src>
import functools

import jax
import jax.numpy as jnp
from jax.experimental import pallas as pl
from jax.experimental.pallas import tpu as pltpu

_TM = 256                               # row tile for the tiled fallback path
_TN = 256                               # lane tile for the tiled fallback path
_SINGLE_BLOCK_BYTES = 6 * 1024 * 1024   # total-operand gate for the no-grid path


# ---------------------------------------------------------------------------
# Kernels
# ---------------------------------------------------------------------------
def _vmem_spec():
    return pl.BlockSpec(memory_space=pltpu.MemorySpace.VMEM)


def _linear_kernel(a_ref, b_ref, bias_ref, o_ref, *, relu):
    """One-shot (full-K) matmul + bias (+ ReLU); accumulate in f32."""
    out = jnp.dot(a_ref[...], b_ref[...], preferred_element_type=jnp.float32)
    out = out + bias_ref[...]
    if relu:
        out = jnp.maximum(out, 0.0)
    o_ref[...] = out.astype(o_ref.dtype)


def _mlp3_kernel(x_ref, w1_ref, b1_ref, w2_ref, b2_ref, w3_ref, b3_ref, o_ref):
    """Fused 3-layer MLP (Linear-ReLU-Linear-ReLU-Linear), all in VMEM."""
    h = jnp.dot(x_ref[...], w1_ref[...], preferred_element_type=jnp.float32)
    h = jnp.maximum(h + b1_ref[...], 0.0)
    h = jnp.dot(h, w2_ref[...], preferred_element_type=jnp.float32)
    h = jnp.maximum(h + b2_ref[...], 0.0)
    o = jnp.dot(h, w3_ref[...], preferred_element_type=jnp.float32) + b3_ref[...]
    o_ref[...] = o.astype(o_ref.dtype)


def _mlp2_kernel(x_ref, w1_ref, b1_ref, w2_ref, b2_ref, o_ref):
    """Fused Pong head fc1-ReLU-fc2; bf16 matmuls, f32 bias/ReLU/accum."""
    h = jnp.dot(x_ref[...], w1_ref[...], preferred_element_type=jnp.float32)
    h = jnp.maximum(h + b1_ref[...], 0.0)
    h = h.astype(w2_ref.dtype)
    o = jnp.dot(h, w2_ref[...], preferred_element_type=jnp.float32) + b2_ref[...]
    o_ref[...] = o.astype(o_ref.dtype)


# ---------------------------------------------------------------------------
# Linear wrapper (single-block when everything fits VMEM, else M x N tiled)
# ---------------------------------------------------------------------------
def linear_pallas(x, w, b2d, *, relu, out_dtype=None):
    """x: (M, K); w: (K, N) pre-transposed/pre-cast at init; b2d: (1, N) f32."""
    M, K = x.shape
    K2, N = w.shape
    assert K == K2, (K, K2)
    if out_dtype is None:
        out_dtype = x.dtype
    kernel = functools.partial(_linear_kernel, relu=relu)

    total_bytes = (
        x.size * x.dtype.itemsize
        + w.size * w.dtype.itemsize
        + b2d.size * b2d.dtype.itemsize
        + M * N * jnp.dtype(out_dtype).itemsize
    )
    if total_bytes <= _SINGLE_BLOCK_BYTES:
        # Small problem: single invocation, whole operands resident in VMEM,
        # no grid / no accumulator / no pipeline bookkeeping.
        return pl.pallas_call(
            kernel,
            out_shape=jax.ShapeDtypeStruct((M, N), out_dtype),
            in_specs=[_vmem_spec(), _vmem_spec(), _vmem_spec()],
            out_specs=_vmem_spec(),
        )(x, w, b2d)

    # Large problem (e.g. big-batch im2col): tile along M and N with whole-K
    # blocks (no accumulator scratch); both axes "parallel" for megacore.
    grid = (pl.cdiv(M, _TM), pl.cdiv(N, _TN))
    return pl.pallas_call(
        kernel,
        out_shape=jax.ShapeDtypeStruct((M, N), out_dtype),
        grid_spec=pltpu.PrefetchScalarGridSpec(
            num_scalar_prefetch=0,
            grid=grid,
            in_specs=[
                pl.BlockSpec((_TM, K), lambda i, j: (i, 0)),
                pl.BlockSpec((K, _TN), lambda i, j: (0, j)),
                pl.BlockSpec((1, _TN), lambda i, j: (0, j)),
            ],
            out_specs=pl.BlockSpec((_TM, _TN), lambda i, j: (i, j)),
        ),
        compiler_params=pltpu.CompilerParams(
            dimension_semantics=("parallel", "parallel"),
        ),
    )(x, w, b2d)


def mlp3_pallas(x, w1, b1, w2, b2, w3, b3):
    """Fused CartPole head: (B, 4) -> (B, num_actions) in a single launch."""
    return pl.pallas_call(
        _mlp3_kernel,
        out_shape=jax.ShapeDtypeStruct((x.shape[0], w3.shape[1]), jnp.float32),
        in_specs=[_vmem_spec() for _ in range(7)],
        out_specs=_vmem_spec(),
    )(x, w1, b1, w2, b2, w3, b3)


def mlp2_pallas(x, w1, b1, w2, b2):
    """Fused Pong head fc1+fc2: (B, 3136) -> (B, num_actions), one launch."""
    return pl.pallas_call(
        _mlp2_kernel,
        out_shape=jax.ShapeDtypeStruct((x.shape[0], w2.shape[1]), jnp.float32),
        in_specs=[_vmem_spec() for _ in range(5)],
        out_specs=_vmem_spec(),
    )(x, w1, b1, w2, b2)


# ---------------------------------------------------------------------------
# Conv-as-matmul glue (NHWC layout end-to-end, no inter-layer transposes)
# ---------------------------------------------------------------------------
def _im2col_nhwc(x, kh, kw, stride):
    """x: (B, H, W, C) -> (B*Ho*Wo, kh*kw*C) with feature order (kh, kw, C)."""
    b, h, w, c = x.shape
    ho = (h - kh) // stride + 1
    wo = (w - kw) // stride + 1
    # TODO(synk): fuse this patch gather into the Pallas conv kernel (index_map
    # over (b, ho, wo) tiles / manual DMA) so the im2col matrix is never
    # materialized in HBM at training batch sizes.
    patches = [
        x[:, i : i + stride * ho : stride, j : j + stride * wo : stride, :]
        for i in range(kh)
        for j in range(kw)
    ]
    cols = jnp.concatenate(patches, axis=-1)            # (B, Ho, Wo, kh*kw*C)
    return cols.reshape(b * ho * wo, kh * kw * c), ho, wo


def conv2d_pallas(x_nhwc, w2d, b2d, *, k, stride, relu):
    """x_nhwc: (B,H,W,C) bf16; w2d: (k*k*C, O) bf16 pre-permuted -> (B,Ho,Wo,O)."""
    b = x_nhwc.shape[0]
    cols, ho, wo = _im2col_nhwc(x_nhwc, k, k, stride)
    y = linear_pallas(cols, w2d, b2d, relu=relu, out_dtype=x_nhwc.dtype)
    return y.reshape(b, ho, wo, w2d.shape[1])            # stays NHWC


# ---------------------------------------------------------------------------
# Parameter init (PyTorch layouts) + one-time preprocessing to matmul form
# ---------------------------------------------------------------------------
def _init_linear(key, in_f, out_f):
    kw_, kb_ = jax.random.split(key)
    bound = 1.0 / jnp.sqrt(in_f)
    w = jax.random.uniform(kw_, (out_f, in_f), jnp.float32, -bound, bound)
    b = jax.random.uniform(kb_, (out_f,), jnp.float32, -bound, bound)
    return w, b


def _init_conv(key, out_c, in_c, k):
    kw_, kb_ = jax.random.split(key)
    bound = 1.0 / jnp.sqrt(in_c * k * k)
    w = jax.random.uniform(kw_, (out_c, in_c, k, k), jnp.float32, -bound, bound)
    b = jax.random.uniform(kb_, (out_c,), jnp.float32, -bound, bound)
    return w, b


def init_dqn_params(env, num_actions, seed=0):
    """Raw parameters in PyTorch layouts (Linear: (out,in); Conv: OIHW)."""
    key = jax.random.PRNGKey(seed)
    if env == "CartPole-v1":
        k1, k2, k3 = jax.random.split(key, 3)
        return {
            "fc1": _init_linear(k1, 4, 128),
            "fc2": _init_linear(k2, 128, 128),
            "fc3": _init_linear(k3, 128, num_actions),
        }
    elif env == "ALE/Pong-v5":
        k1, k2, k3, k4, k5 = jax.random.split(key, 5)
        return {
            "conv1": _init_conv(k1, 32, 4, 8),
            "conv2": _init_conv(k2, 64, 32, 4),
            "conv3": _init_conv(k3, 64, 64, 3),
            "fc1": _init_linear(k4, 64 * 7 * 7, 512),
            "fc2": _init_linear(k5, 512, num_actions),
        }
    raise ValueError(env)


def prepare_params(env, raw):
    """One-time conversion to matmul-ready (K, N) weights / (1, N) f32 biases."""
    def lin(w, b, dtype=jnp.float32):      # PyTorch Linear (out, in) -> (in, out)
        return w.T.astype(dtype), b.reshape(1, -1).astype(jnp.float32)

    def conv(w, b, scale=1.0):             # OIHW -> (kh*kw*C, O), matches im2col
        o, c, kh, kw = w.shape
        w2d = (w * scale).transpose(2, 3, 1, 0).reshape(kh * kw * c, o)
        return w2d.astype(jnp.bfloat16), b.reshape(1, -1).astype(jnp.float32)

    if env == "CartPole-v1":
        return {
            "fc1": lin(*raw["fc1"]),
            "fc2": lin(*raw["fc2"]),
            "fc3": lin(*raw["fc3"]),
        }
    elif env == "ALE/Pong-v5":
        # conv1: fold the 1/255 input scale into the weights (bias unchanged).
        # fc1 consumes the flatten of the conv3 output; PyTorch flattens NCHW
        # (c, h, w) order while we flatten NHWC (h, w, c) -> permute rows once.
        w1, b1 = raw["fc1"]
        w1 = (
            w1.reshape(w1.shape[0], 64, 7, 7)
            .transpose(0, 2, 3, 1)
            .reshape(w1.shape[0], 64 * 7 * 7)
        )
        return {
            "conv1": conv(*raw["conv1"], scale=1.0 / 255.0),
            "conv2": conv(*raw["conv2"]),
            "conv3": conv(*raw["conv3"]),
            "fc1": lin(w1, b1, jnp.bfloat16),
            "fc2": lin(*raw["fc2"], jnp.bfloat16),
        }
    raise ValueError(env)


# ---------------------------------------------------------------------------
# Forward pass (semantics of DQN.forward)
# ---------------------------------------------------------------------------
def dqn_forward(env, params, x):
    if env == "CartPole-v1":
        (w1, b1), (w2, b2), (w3, b3) = params["fc1"], params["fc2"], params["fc3"]
        return mlp3_pallas(x, w1, b1, w2, b2, w3, b3)
    elif env == "ALE/Pong-v5":
        # x: (B, 4, 84, 84) NCHW. The 1/255 scale is folded into conv1 weights.
        h = jnp.transpose(x, (0, 2, 3, 1)).astype(jnp.bfloat16)              # NHWC bf16
        h = conv2d_pallas(h, *params["conv1"], k=8, stride=4, relu=True)     # (B,20,20,32)
        h = conv2d_pallas(h, *params["conv2"], k=4, stride=2, relu=True)     # (B,9,9,64)
        h = conv2d_pallas(h, *params["conv3"], k=3, stride=1, relu=True)     # (B,7,7,64)
        h = h.reshape(h.shape[0], -1)        # NHWC flatten (fc1 rows permuted at init)
        (w1, b1), (w2, b2) = params["fc1"], params["fc2"]
        return mlp2_pallas(h, w1, b1, w2, b2)                                # (B, A) f32
    raise ValueError(env)


# ---------------------------------------------------------------------------
# Pure-JAX references (PyTorch layouts) for a correctness sanity check
# ---------------------------------------------------------------------------
def _ref_forward_cart(raw, x):
    (w1, b1), (w2, b2), (w3, b3) = raw["fc1"], raw["fc2"], raw["fc3"]
    h = jax.nn.relu(x @ w1.T + b1)
    h = jax.nn.relu(h @ w2.T + b2)
    return h @ w3.T + b3


def _ref_forward_pong(raw, x):
    def conv(h, w, b, s):
        y = jax.lax.conv_general_dilated(
            h, w, (s, s), "VALID", dimension_numbers=("NCHW", "OIHW", "NCHW"))
        return jax.nn.relu(y + b[None, :, None, None])

    h = x / 255.0
    h = conv(h, *raw["conv1"], 4)
    h = conv(h, *raw["conv2"], 2)
    h = conv(h, *raw["conv3"], 1)
    h = h.reshape(h.shape[0], -1)              # NCHW flatten, like nn.Flatten
    (w1, b1), (w2, b2) = raw["fc1"], raw["fc2"]
    h = jax.nn.relu(h @ w1.T + b1)
    return h @ w2.T + b2


if __name__ == "__main__":
    key = jax.random.PRNGKey(0)
    k_cart, k_pong = jax.random.split(key)

    # --- CartPole-v1: fused MLP 4 -> 128 -> 128 -> 2 (single launch, f32) -----
    cart_raw = init_dqn_params("CartPole-v1", num_actions=2, seed=0)
    cart_params = prepare_params("CartPole-v1", cart_raw)
    cart_fwd = jax.jit(functools.partial(dqn_forward, "CartPole-v1"))
    x_cart = jax.random.normal(k_cart, (8, 4), jnp.float32)
    q_cart = cart_fwd(cart_params, x_cart)
    jax.block_until_ready(q_cart)
    assert q_cart.shape == (8, 2)
    ref_cart = _ref_forward_cart(cart_raw, x_cart)
    assert bool(jnp.allclose(q_cart, ref_cart, rtol=5e-2, atol=5e-2))

    # --- ALE/Pong-v5: conv tower (84x84 required by the 64*7*7 flatten) -------
    pong_raw = init_dqn_params("ALE/Pong-v5", num_actions=6, seed=0)
    pong_params = prepare_params("ALE/Pong-v5", pong_raw)
    pong_fwd = jax.jit(functools.partial(dqn_forward, "ALE/Pong-v5"))
    x_pong = jax.random.uniform(k_pong, (2, 4, 84, 84), jnp.float32, 0.0, 255.0)
    q_pong = pong_fwd(pong_params, x_pong)
    jax.block_until_ready(q_pong)
    assert q_pong.shape == (2, 6)
    ref_pong = _ref_forward_pong(pong_raw, x_pong)
    assert bool(jnp.allclose(q_pong, ref_pong, rtol=5e-2, atol=5e-2))

    print("KERNEL_OK")
</pallas_src>

<mosaic_0001>
module attributes {stable_mosaic.version = 11 : i64} {
  func.func @_mlp3_kernel(%arg0: memref<8x4xf32, #tpu.memory_space<vmem>>, %arg1: memref<4x128xf32, #tpu.memory_space<vmem>>, %arg2: memref<1x128xf32, #tpu.memory_space<vmem>>, %arg3: memref<128x128xf32, #tpu.memory_space<vmem>>, %arg4: memref<1x128xf32, #tpu.memory_space<vmem>>, %arg5: memref<128x2xf32, #tpu.memory_space<vmem>>, %arg6: memref<1x2xf32, #tpu.memory_space<vmem>>, %arg7: memref<8x2xf32, #tpu.memory_space<vmem>>) attributes {dimension_semantics = [], scalar_prefetch = 0 : i64, scratch_operands = 0 : i64, tpu.core_type = #tpu.core_type<tc>} {
    %c0 = arith.constant 0 : index
    %c0_0 = arith.constant 0 : index
    %0 = vector.load %arg0[%c0, %c0_0] : memref<8x4xf32, #tpu.memory_space<vmem>>, vector<8x4xf32>
    %c0_1 = arith.constant 0 : index
    %c0_2 = arith.constant 0 : index
    %1 = vector.load %arg1[%c0_1, %c0_2] : memref<4x128xf32, #tpu.memory_space<vmem>>, vector<4x128xf32>
    %cst = arith.constant dense<0.000000e+00> : vector<8x128xf32>
    %2 = tpu.matmul %0, %1, %cst {dimension_numbers = #tpu.dot_dimension_numbers<[1], [0], [0], [1], [0, 0, 1, 1], [], []>} : vector<8x4xf32>, vector<4x128xf32>, vector<8x128xf32> -> vector<8x128xf32>
    %c0_3 = arith.constant 0 : index
    %c0_4 = arith.constant 0 : index
    %3 = vector.load %arg2[%c0_3, %c0_4] : memref<1x128xf32, #tpu.memory_space<vmem>>, vector<1x128xf32>
    %4 = vector.broadcast %3 : vector<1x128xf32> to vector<8x128xf32>
    %5 = arith.addf %2, %4 : vector<8x128xf32>
    %cst_5 = arith.constant 0.000000e+00 : f32
    %6 = vector.broadcast %cst_5 : f32 to vector<8x128xf32>
    %7 = arith.maximumf %5, %6 : vector<8x128xf32>
    %c0_6 = arith.constant 0 : index
    %c0_7 = arith.constant 0 : index
    %8 = vector.load %arg3[%c0_6, %c0_7] : memref<128x128xf32, #tpu.memory_space<vmem>>, vector<128x128xf32>
    %cst_8 = arith.constant dense<0.000000e+00> : vector<8x128xf32>
    %9 = tpu.matmul %7, %8, %cst_8 {dimension_numbers = #tpu.dot_dimension_numbers<[1], [0], [0], [1], [0, 0, 1, 1], [], []>} : vector<8x128xf32>, vector<128x128xf32>, vector<8x128xf32> -> vector<8x128xf32>
    %c0_9 = arith.constant 0 : index
    %c0_10 = arith.constant 0 : index
    %10 = vector.load %arg4[%c0_9, %c0_10] : memref<1x128xf32, #tpu.memory_space<vmem>>, vector<1x128xf32>
    %11 = vector.broadcast %10 : vector<1x128xf32> to vector<8x128xf32>
    %12 = arith.addf %9, %11 : vector<8x128xf32>
    %cst_11 = arith.constant 0.000000e+00 : f32
    %13 = vector.broadcast %cst_11 : f32 to vector<8x128xf32>
    %14 = arith.maximumf %12, %13 : vector<8x128xf32>
    %c0_12 = arith.constant 0 : index
    %c0_13 = arith.constant 0 : index
    %15 = vector.load %arg5[%c0_12, %c0_13] : memref<128x2xf32, #tpu.memory_space<vmem>>, vector<128x2xf32>
    %cst_14 = arith.constant dense<0.000000e+00> : vector<8x2xf32>
    %16 = tpu.matmul %14, %15, %cst_14 {dimension_numbers = #tpu.dot_dimension_numbers<[1], [0], [0], [1], [0, 0, 1, 1], [], []>} : vector<8x128xf32>, vector<128x2xf32>, vector<8x2xf32> -> vector<8x2xf32>
    %c0_15 = arith.constant 0 : index
    %c0_16 = arith.constant 0 : index
    %17 = vector.load %arg6[%c0_15, %c0_16] : memref<1x2xf32, #tpu.memory_space<vmem>>, vector<1x2xf32>
    %18 = vector.broadcast %17 : vector<1x2xf32> to vector<8x2xf32>
    %19 = arith.addf %16, %18 : vector<8x2xf32>
    %c0_17 = arith.constant 0 : index
    %c0_18 = arith.constant 0 : index
    %20 = vector.load %arg7[%c0_17, %c0_18] : memref<8x2xf32, #tpu.memory_space<vmem>>, vector<8x2xf32>
    tpu.vector_store %arg7[%c0_17, %c0_18], %19 {strides = array<i32>} : memref<8x2xf32, #tpu.memory_space<vmem>>, vector<8x2xf32>,
    return
  }
}

</mosaic_0001>

<bundles_post_ra>
// kernel: dqn_forward.1
= control target key start
LH: loop header
LB: loop body
LE: loop exit
PB: predicated region body
PF: predicated region fallthrough
CT: control target
= control target key end

     0   :  { %vm39_vm0 = vcmask 1043456   ;;  %vm35_vm1 = vcmask 31744   ;;  %v474_v0 = vmov 0.0   ;;  %vm475_vm2 = vmmov 0   ;;  %s647_s1 = inlined_call_operand.vmem [shape: f32[4,128], index: 1, kind: input, shape index: {}]   ;;  %s648_s0 = inlined_call_operand.vmem [shape: f32[8,4], index: 0, kind: input, shape index: {}]   ;;  %s649_s3 = inlined_call_operand.vmem [shape: f32[128,128], index: 3, kind: input, shape index: {}]   ;;  %s650_s5 = inlined_call_operand.vmem [shape: f32[128,2], index: 5, kind: input, shape index: {}]   ;;  %s651_s2 = inlined_call_operand.vmem [shape: f32[1,128], index: 2, kind: input, shape index: {}]   ;;  %s652_s4 = inlined_call_operand.vmem [shape: f32[1,128], index: 4, kind: input, shape index: {}]   ;;  %s653_s6 = inlined_call_operand.vmem [shape: f32[1,2], index: 6, kind: input, shape index: {}]   ;;  %s654_s7 = inlined_call_operand.vmem [shape: f32[8,2], index: 7, kind: output, shape index: {}]  }
   0x1   :  { %348 = vmatprep.subr.mxu0 %v474_v0  ;;  %v27_v1 = vld [vmem:[%s647_s1] sm:$0xf]  ;;  %350 = vmatprep.mubr.msk.f32.mxu0 %vm475_vm2, %v474_v0  ;;  %v476_v4 = vmov 0.0|0.0   ;;  %v115_v5 = vld [vmem:[%s649_s3 + $0x8] sm:$0xff]  ;;  %v116_v6 = vld [vmem:[%s649_s3 + $0x10] sm:$0xff]  ;;  %vm301_vm3 = vcmask 15360  }
   0x2   :  { %v26_v2 = vld [vmem:[%s648_s0] sm:$0xff]  ;;  %349 = vmatpush3.msk.msra.mxu0 %vm39_vm0, %v27_v1  ;;  %423 = vmatprep.subr.bf16.mxu1 %v476_v4  ;;  %v117_v7 = vld [vmem:[%s649_s3 + $0x18] sm:$0xff]  ;;  %v119_v11 = vld [vmem:[%s649_s3 + $0x28] sm:$0xff] }
   0x3   :  { %v114_v3 = vld [vmem:[%s649_s3] sm:$0xff]  ;;  %351 = vmatmul.mubr.msk.f32.vlgmr.msra.gmra.mrb[0].mxu0 %vm35_vm1, %v26_v2  ;;  %385 = vmatprep.mubr.msk.f32.mxu1 %vm475_vm2, %v474_v0  ;;  %v427_v9 = vpack.c.bf16 %v117_v7, %v116_v6  ;;  %v120_v13 = vld [vmem:[%s649_s3 + $0x30] sm:$0xff]  ;;  %v121_v14 = vld [vmem:[%s649_s3 + $0x38] sm:$0xff] }
   0x4   :  { %v424_v8 = vpack.c.bf16 %v115_v5, %v114_v3  ;;  %447 = vmatprep.subr.bf16.mxu0 %v476_v4  ;;  %420 = vmatprep.mubr.msk.f32.mxu0 %vm475_vm2, %v474_v0  ;;  %v118_v10 = vld [vmem:[%s649_s3 + $0x20] sm:$0xff]  ;;  %v433_v15 = vpack.c.bf16 %v121_v14, %v120_v13  ;;  %v123_v17 = vld [vmem:[%s649_s3 + $0x48] sm:$0xff]  ;;  %v124_v19 = vld [vmem:[%s649_s3 + $0x50] sm:$0xff] }
   0x5   :  { %v430_v12 = vpack.c.bf16 %v119_v11, %v118_v10  ;;  %v122_v16 = vld [vmem:[%s649_s3 + $0x40] sm:$0xff]  ;;  %v125_v20 = vld [vmem:[%s649_s3 + $0x58] sm:$0xff]  ;;  %v127_v23 = vld [vmem:[%s649_s3 + $0x68] sm:$0xff] }
   0x6   :  { %425 = vmatpush3.bf16.msra.mxu1 %v424_v8  ;;  %v436_v18 = vpack.c.bf16 %v123_v17, %v122_v16  ;;  %v439_v21 = vpack.c.bf16 %v125_v20, %v124_v19  ;;  %v126_v22 = vld [vmem:[%s649_s3 + $0x60] sm:$0xff]  ;;  %v128_v25 = vld [vmem:[%s649_s3 + $0x70] sm:$0xff]  ;;  %v129_v26 = vld [vmem:[%s649_s3 + $0x78] sm:$0xff] }
   0x7   :  { %426 = vmatprep.subr.bf16.mxu1 %v476_v4  ;;  %v442_v24 = vpack.c.bf16 %v127_v23, %v126_v22  ;;  %v445_v27 = vpack.c.bf16 %v129_v26, %v128_v25  ;;  %v208_v28 = vld [vmem:[%s650_s5] sm:$0xff]  ;;  %v209_v29 = vld [vmem:[%s650_s5 + $0x8] sm:$0xff]  ;;  %v210_v30 = vld [vmem:[%s650_s5 + $0x10] sm:$0xff] }
   0x8   :  { %v448_v31 = vpack.c.bf16 %v209_v29, %v208_v28  ;;  %v211_v32 = vld [vmem:[%s650_s5 + $0x18] sm:$0xff]  ;;  %v212_v34 = vld [vmem:[%s650_s5 + $0x20] sm:$0xff]  ;;  %v213_v35 = vld [vmem:[%s650_s5 + $0x28] sm:$0xff] }
   0x9   :  { %v451_v33 = vpack.c.bf16 %v211_v32, %v210_v30  ;;  %v454_v36 = vpack.c.bf16 %v213_v35, %v212_v34  ;;  %v214_v37 = vld [vmem:[%s650_s5 + $0x30] sm:$0xff]  ;;  %v215_v38 = vld [vmem:[%s650_s5 + $0x38] sm:$0xff]  ;;  %v216_v40 = vld [vmem:[%s650_s5 + $0x40] sm:$0xff] }
   0xa   :  { %428 = vmatpush3.bf16.msra.mxu1 %v427_v9  ;;  %449 = vmatpush3.bf16.msra.mxu0 %v448_v31  ;;  %v457_v39 = vpack.c.bf16 %v215_v38, %v214_v37  ;;  %v217_v41 = vld [vmem:[%s650_s5 + $0x48] sm:$0xff]  ;;  %v218_v43 = vld [vmem:[%s650_s5 + $0x50] sm:$0xff]  ;;  %v219_v44 = vld [vmem:[%s650_s5 + $0x58] sm:$0xff] }
   0xb   :  { %429 = vmatprep.subr.bf16.mxu1 %v476_v4  ;;  %450 = vmatprep.subr.bf16.mxu0 %v476_v4  ;;  %v460_v42 = vpack.c.bf16 %v217_v41, %v216_v40  ;;  %v463_v45 = vpack.c.bf16 %v219_v44, %v218_v43  ;;  %v220_v46 = vld [vmem:[%s650_s5 + $0x60] sm:$0xff]  ;;  %v221_v47 = vld [vmem:[%s650_s5 + $0x68] sm:$0xff]  ;;  %v222_v54 = vld [vmem:[%s650_s5 + $0x70] sm:$0xff] }
   0xc   :  { %v466_v48 = vpack.c.bf16 %v221_v47, %v220_v46  ;;  %v307_v49 = vld [vmem:[%s651_s2] ss:$0 sm:$0xff]  ;;  %v223_v55 = vld [vmem:[%s650_s5 + $0x78] sm:$0xff] }
   0xd   :  { %v469_v56 = vpack.c.bf16 %v223_v55, %v222_v54  ;;  %v310_v57 = vld [vmem:[%s652_s4] ss:$0 sm:$0xff] }
   0xe   :  { %431 = vmatpush3.bf16.msra.mxu1 %v430_v12  ;;  %452 = vmatpush3.bf16.msra.mxu0 %v451_v33  ;;  %v311_v62 = vld [vmem:[%s653_s6] ss:$0 sm:$0xff] }
   0xf   :  { %432 = vmatprep.subr.bf16.mxu1 %v476_v4  ;;  %453 = vmatprep.subr.bf16.mxu0 %v476_v4 }
  0x12   :  { %434 = vmatpush3.bf16.msra.mxu1 %v433_v15  ;;  %455 = vmatpush3.bf16.msra.mxu0 %v454_v36 }
  0x13   :  { %435 = vmatprep.subr.bf16.mxu1 %v476_v4  ;;  %456 = vmatprep.subr.bf16.mxu0 %v476_v4 }
  0x16   :  { %437 = vmatpush3.bf16.msra.mxu1 %v436_v18  ;;  %458 = vmatpush3.bf16.msra.mxu0 %v457_v39 }
  0x17   :  { %438 = vmatprep.subr.bf16.mxu1 %v476_v4  ;;  %459 = vmatprep.subr.bf16.mxu0 %v476_v4 }
  0x1a   :  { %440 = vmatpush3.bf16.msra.mxu1 %v439_v21  ;;  %461 = vmatpush3.bf16.msra.mxu0 %v460_v42 }
  0x1b   :  { %441 = vmatprep.subr.bf16.mxu1 %v476_v4  ;;  %462 = vmatprep.subr.bf16.mxu0 %v476_v4 }
  0x1e   :  { %443 = vmatpush3.bf16.msra.mxu1 %v442_v24  ;;  %464 = vmatpush3.bf16.msra.mxu0 %v463_v45 }
  0x1f   :  { %444 = vmatprep.subr.bf16.mxu1 %v476_v4  ;;  %465 = vmatprep.subr.bf16.mxu0 %v476_v4 }
  0x22   :  { %446 = vmatpush3.bf16.msra.mxu1 %v445_v27  ;;  %467 = vmatpush3.bf16.msra.mxu0 %v466_v48 }
  0x23   :  { %468 = vmatprep.subr.bf16.mxu0 %v476_v4 }
  0x26   :  { %470 = vmatpush3.bf16.msra.mxu0 %v469_v56 }
  0xd6   :  { %v109_v50 = vpop.f32.mrb[0].mxu0 }
  0xd7   :  { %v110_v51 = vadd.f32 %v307_v49, %v109_v50  ;;  %v352_v52 = vpop.f32.mrb[1].mxu0 }
  0xd9   :  { %v113_v53 = vmax.f32 %v110_v51, 0.0 }
  0xdb   :  { %386 = vmatmul.mubr.f32.vlgmr.msra.gmra.mrb[0].mxu1 %v113_v53 }
 0x1ae   :  { %v203_v58 = vpop.f32.mrb[0].mxu1 }
 0x1af   :  { %v204_v59 = vadd.f32 %v310_v57, %v203_v58  ;;  %v387_v60 = vpop.f32.mrb[1].mxu1 }
 0x1b1   :  { %v207_v61 = vmax.f32 %v204_v59, 0.0 }
 0x1b3   :  { %421 = vmatmul.mubr.f32.vlgmr.msra.gmra.mrb[2].mxu0 %v207_v61 }
 0x286   :  { %v297_v63 = vpop.f32.mrb[2].mxu0 }
 0x287   :  { %v298_v0 = vadd.f32 %v311_v62, %v297_v63  ;;  %v422_v1 = vpop.f32.mrb[3].mxu0 }
 0x289   :  { %302 = vst.msk [vmem:[%s654_s7] sm:$0xff] %vm301_vm3, %v298_v0 }

</bundles_post_ra>
